<compile_context>
chip_gen: v7x
topology: tpu7x:2x2x1
jax: 0.10.0
libtpu: 0.0.40
codegen_flags: <defaults>
</compile_context>

<pallas_src>
import functools

import jax
import jax.numpy as jnp
from jax.experimental import pallas as pl
from jax.experimental.pallas import tpu as pltpu

EPS = 1e-3  # matches nn.BatchNorm2d(nOut, eps=0.001)


def _is_v7x():
    """Channel-group sharding only pays off on v7x's two TensorCores."""
    try:
        kind = jax.devices()[0].device_kind.lower()
    except Exception:
        return False
    return "v7" in kind


def _vmem_limit(need_bytes):
    # Explicit scoped-VMEM limit (defaults are only 16/32 MiB); clamp to the smallest
    # physical VMEM across supported generations (v7x: 64 MiB).
    return int(min(64 * 2**20, max(16 * 2**20, int(need_bytes) + (4 << 20))))


def _conv_stats_kernel(x_ref, w_ref, mask_ref, y_ref, sum_ref, ssq_ref, *,
                       w_pad, k, fold_taps):
    """Direct conv for one sample + partial BN statistics.

    x_ref:    (C_in_p, L_x)       flattened, spatially padded input sample (native dtype)
    w_ref:    fold_taps: (TCo, k*k*C_in_p)  else: (k, k, TCo, C_in_p)
    mask_ref: (1, L_acc) f32      1.0 on valid output columns, 0.0 on padded-width garbage
    y_ref:    (TCo, L_acc)        conv intermediate (flat index = h*W_pad + w)
    sum_ref:  (TCo, 1) f32        per-channel sum     (accumulated over the batch axis)
    ssq_ref:  (TCo, 1) f32        per-channel sum x^2 (accumulated over the batch axis)
    """
    l_acc = y_ref.shape[1]

    if fold_taps:
        # Fold all k^2 taps into the MXU contraction: in-kernel im2col built from
        # k^2 statically-shifted slices stacked along the channel (sublane) axis.
        x_cols = jnp.concatenate(
            [x_ref[:, dy * w_pad + dx: dy * w_pad + dx + l_acc]
             for dy in range(k) for dx in range(k)],
            axis=0)                                             # (k*k*C_in_p, L_acc)
        acc = jnp.dot(w_ref[...], x_cols,
                      preferred_element_type=jnp.float32)       # (TCo, L_acc) f32
    else:
        # Tap loop: each (dy, dx) tap is one MXU matmul over the channel dim,
        # accumulated in a LOCAL f32 value (single store below).
        acc = None
        for dy in range(k):
            for dx in range(k):
                off = dy * w_pad + dx
                contrib = jnp.dot(w_ref[dy, dx], x_ref[:, off:off + l_acc],
                                  preferred_element_type=jnp.float32)
                acc = contrib if acc is None else acc + contrib

    # Single store of the conv tile (possibly downcast to bf16 for HBM).
    y_ref[...] = acc.astype(y_ref.dtype)

    # Partial BN statistics from the f32 accumulator (mask the padded-width columns).
    masked = acc * mask_ref[...]
    psum = jnp.sum(masked, axis=1, keepdims=True)        # (TCo, 1)
    pssq = jnp.sum(acc * masked, axis=1, keepdims=True)  # (TCo, 1)

    @pl.when(pl.program_id(1) == 0)
    def _init():
        sum_ref[...] = jnp.zeros_like(sum_ref)
        ssq_ref[...] = jnp.zeros_like(ssq_ref)

    sum_ref[...] += psum
    ssq_ref[...] += pssq


def _bn_apply_kernel(y_ref, scale_ref, shift_ref, o_ref):
    """y_ref: (TCo, H, W_pad) conv intermediate; o_ref: (TCo, H, W) NCHW output."""
    w_out = o_ref.shape[-1]
    y = y_ref[:, :, :w_out].astype(jnp.float32)              # drop padded-width garbage
    o_ref[...] = (y * scale_ref[...] + shift_ref[...]).astype(o_ref.dtype)


def conv_bn(x, weight, gamma, beta, *, stride=1, eps=EPS, groups=None,
            intermediate_dtype=jnp.bfloat16):
    """x: (N, C_in, H, W) NCHW; weight: (C_out, C_in, k, k); gamma/beta: (C_out,)."""
    N, C_in, H, W = x.shape
    C_out, C_in_w, kh, kw = weight.shape
    assert C_in_w == C_in and kh == kw
    k = kh
    assert k % 2 == 1, "even kSize with padding=(k-1)//2 changes H/W; only odd k supported"
    pad = (k - 1) // 2

    if stride != 1:
        # TODO(synk): stride > 1 down-sampling needs strided tap windows; stride=1 only.
        raise NotImplementedError("conv_bn Pallas kernel supports stride=1 only")

    H_out, W_out = H, W
    H_pad, W_pad = H + 2 * pad, W + 2 * pad

    # Output-channel groups: only worthwhile on v7x (2 TensorCores/chip). On v5e/v6e it
    # halves the MXU M-dim and duplicates the per-sample input DMA, so keep G=1 there.
    if groups is None:
        groups = 2 if (_is_v7x() and C_out % 16 == 0 and C_out >= 128) else 1
    G = groups
    assert C_out % G == 0
    TCo = C_out // G

    # Round C_in up to a multiple of 8 sublanes (zero channels x zero weights == no-op).
    C_in_p = ((C_in + 7) // 8) * 8

    # Single pad pass: conv halo + one extra padded row so every tap window of length
    # L_acc stays in-bounds after flattening, + channel round-up. Reshapes are free.
    x_p = jnp.pad(x, ((0, 0), (0, C_in_p - C_in), (pad, pad + 1), (pad, pad)))
    L_x = (H_pad + 1) * W_pad
    x_flat = x_p.reshape(N, C_in_p, L_x)

    # Conv output lives in padded-width flat layout: flat index = h * W_pad + w.
    L_acc = H_out * W_pad
    col = jnp.arange(L_acc, dtype=jnp.int32) % W_pad
    mask = (col < W_out).astype(jnp.float32).reshape(1, L_acc)

    # Small-C_in layers: fold all taps into one MXU contraction (K = k*k*C_in_p).
    fold_taps = (k * k * C_in_p) <= 256
    if fold_taps:
        # (C_out, C_in, k, k) -> (C_out, dy, dx, C_in_p) -> (C_out, k*k*C_in_p),
        # row order (dy, dx, c) matching the in-kernel im2col concat order.
        w_t = jnp.transpose(weight, (0, 2, 3, 1)).astype(x.dtype)
        w_t = jnp.pad(w_t, ((0, 0), (0, 0), (0, 0), (0, C_in_p - C_in)))
        w_t = w_t.reshape(C_out, k * k * C_in_p)
        w_spec = pl.BlockSpec((TCo, k * k * C_in_p), lambda g, n: (g, 0))
    else:
        # (C_out, C_in, k, k) -> (k, k, C_out, C_in_p); tiny array.
        w_t = jnp.transpose(weight, (2, 3, 0, 1)).astype(x.dtype)
        w_t = jnp.pad(w_t, ((0, 0), (0, 0), (0, 0), (0, C_in_p - C_in)))
        w_spec = pl.BlockSpec((k, k, TCo, C_in_p), lambda g, n: (0, 0, g, 0))

    itemsize_in = jnp.dtype(x.dtype).itemsize
    itemsize_mid = jnp.dtype(intermediate_dtype).itemsize
    itemsize_out = jnp.dtype(x.dtype).itemsize

    # Explicit scoped-VMEM budget: double-buffered blocks + in-kernel temporaries.
    blk1 = (C_in_p * L_x * itemsize_in
            + (w_t.size // G) * itemsize_in
            + L_acc * 4
            + TCo * L_acc * itemsize_mid
            + 2 * TCo * 4)
    tmp1 = ((k * k * C_in_p * L_acc * itemsize_in) if fold_taps else 0) \
        + 3 * TCo * L_acc * 4
    vmem1 = _vmem_limit(2 * blk1 + tmp1)

    conv_flat, csum, cssq = pl.pallas_call(
        functools.partial(_conv_stats_kernel, w_pad=W_pad, k=k, fold_taps=fold_taps),
        out_shape=(
            jax.ShapeDtypeStruct((N, C_out, L_acc), intermediate_dtype),
            jax.ShapeDtypeStruct((C_out, 1), jnp.float32),
            jax.ShapeDtypeStruct((C_out, 1), jnp.float32),
        ),
        grid=(G, N),
        in_specs=[
            pl.BlockSpec((None, C_in_p, L_x), lambda g, n: (n, 0, 0)),
            w_spec,
            pl.BlockSpec((1, L_acc), lambda g, n: (0, 0)),
        ],
        out_specs=(
            pl.BlockSpec((None, TCo, L_acc), lambda g, n: (n, g, 0)),
            pl.BlockSpec((TCo, 1), lambda g, n: (g, 0)),
            pl.BlockSpec((TCo, 1), lambda g, n: (g, 0)),
        ),
        compiler_params=pltpu.CompilerParams(
            dimension_semantics=("parallel", "arbitrary"),
            vmem_limit_bytes=vmem1),
    )(x_flat, w_t, mask)

    # Tiny per-channel math (C_out elements): fold BN into scale/shift.
    # NOTE: E[x^2] - mean^2 variance is cancellation-prone for large-mean activations;
    # acceptable for typical BN inputs (see review).
    count = jnp.float32(N * H_out * W_out)
    mean = csum[:, 0] / count
    var = cssq[:, 0] / count - mean * mean          # biased variance (train mode)
    inv_std = jax.lax.rsqrt(var + eps)
    scale = gamma.astype(jnp.float32) * inv_std
    shift = beta.astype(jnp.float32) - mean * scale
    scale3 = scale.reshape(C_out, 1, 1)
    shift3 = shift.reshape(C_out, 1, 1)

    conv4 = conv_flat.reshape(N, C_out, H_out, W_pad)  # free reshape (split last dim)

    blk2 = (TCo * H_out * W_pad * itemsize_mid
            + TCo * H_out * W_out * itemsize_out
            + 2 * TCo * 4)
    vmem2 = _vmem_limit(2 * blk2 + 2 * TCo * H_out * W_out * 4)

    out = pl.pallas_call(
        _bn_apply_kernel,
        out_shape=jax.ShapeDtypeStruct((N, C_out, H_out, W_out), x.dtype),
        grid=(G, N),
        in_specs=[
            pl.BlockSpec((None, TCo, H_out, W_pad), lambda g, n: (n, g, 0, 0)),
            pl.BlockSpec((TCo, 1, 1), lambda g, n: (g, 0, 0)),
            pl.BlockSpec((TCo, 1, 1), lambda g, n: (g, 0, 0)),
        ],
        out_specs=pl.BlockSpec((None, TCo, H_out, W_out), lambda g, n: (n, g, 0, 0)),
        compiler_params=pltpu.CompilerParams(
            dimension_semantics=("parallel", "parallel"),
            vmem_limit_bytes=vmem2),
    )(conv4, scale3, shift3)

    return out


def conv_bn_ref(x, weight, gamma, beta, *, stride=1, eps=EPS):
    pad = (weight.shape[-1] - 1) // 2
    y = jax.lax.conv_general_dilated(
        x.astype(jnp.float32), weight.astype(jnp.float32),
        window_strides=(stride, stride),
        padding=[(pad, pad), (pad, pad)],
        dimension_numbers=("NCHW", "OIHW", "NCHW"),
        precision=jax.lax.Precision.HIGHEST)
    mean = jnp.mean(y, axis=(0, 2, 3), keepdims=True)
    var = jnp.mean((y - mean) ** 2, axis=(0, 2, 3), keepdims=True)
    yhat = (y - mean) * jax.lax.rsqrt(var + eps)
    return yhat * gamma[None, :, None, None] + beta[None, :, None, None]


if __name__ == "__main__":
    key = jax.random.PRNGKey(0)

    def check(cfg_key, N, C_in, C_out, H, W, k, *, groups=None,
              intermediate_dtype=jnp.bfloat16, atol=2e-2, rtol=2e-2):
        kx, kww, kg, kb = jax.random.split(cfg_key, 4)
        x = jax.random.normal(kx, (N, C_in, H, W), dtype=jnp.float32)
        weight = 0.2 * jax.random.normal(kww, (C_out, C_in, k, k), dtype=jnp.float32)
        # BatchNorm affine params (PyTorch defaults are gamma=1, beta=0; randomized
        # here for a stronger check).
        gamma = 1.0 + 0.1 * jax.random.normal(kg, (C_out,), dtype=jnp.float32)
        beta = 0.1 * jax.random.normal(kb, (C_out,), dtype=jnp.float32)

        out = conv_bn(x, weight, gamma, beta, groups=groups,
                      intermediate_dtype=intermediate_dtype)
        out = jax.block_until_ready(out)

        ref = conv_bn_ref(x, weight, gamma, beta)
        assert out.shape == (N, C_out, H, W)
        err = float(jnp.max(jnp.abs(out - ref)))
        assert jnp.allclose(out, ref, atol=atol, rtol=rtol), err
        return out

    k0, k1, k2 = jax.random.split(key, 3)
    # Primary small config (folded-tap path, f32 intermediate -> tight tolerance).
    check(k0, 2, 4, 8, 16, 16, 3, intermediate_dtype=jnp.float32, atol=1e-3, rtol=1e-3)
    # Exercise the multi-channel-group (G=2) path and the bf16 intermediate.
    check(k1, 2, 4, 16, 16, 16, 3, groups=2)
    # Exercise the per-tap (non-folded) path: k*k*C_in_p = 288 > 256.
    check(k2, 2, 32, 16, 8, 8, 3, intermediate_dtype=jnp.float32, atol=1e-3, rtol=1e-3)

    print("KERNEL_OK")
</pallas_src>

<mosaic_0001>
module attributes {stable_mosaic.version = 11 : i64} {
  func.func @_conv_stats_kernel(%arg0: i32, %arg1: i32, %arg2: memref<1x8x342xf32, #tpu.memory_space<vmem>>, %arg3: memref<8x72xf32, #tpu.memory_space<vmem>>, %arg4: memref<1x288xf32, #tpu.memory_space<vmem>>, %arg5: memref<1x8x288xf32, #tpu.memory_space<vmem>>, %arg6: memref<8x1xf32, #tpu.memory_space<vmem>>, %arg7: memref<8x1xf32, #tpu.memory_space<vmem>>) attributes {dimension_semantics = [#tpu.dimension_semantics<parallel>, #tpu.dimension_semantics<arbitrary>], iteration_bounds = array<i64: 1, 2>, scalar_prefetch = 0 : i64, scratch_operands = 0 : i64, tpu.core_type = #tpu.core_type<tc>, window_params = [{transform_indices = @transform_0, window_bounds = array<i64: 1, 8, 342>}, {transform_indices = @transform_1, window_bounds = array<i64: 8, 72>}, {pipeline_mode = #tpu.pipeline_mode<synchronous>, transform_indices = @transform_2, window_bounds = array<i64: 1, 288>}, {transform_indices = @transform_3, window_bounds = array<i64: 1, 8, 288>}, {transform_indices = @transform_4, window_bounds = array<i64: 8, 1>}, {transform_indices = @transform_5, window_bounds = array<i64: 8, 1>}]} {
    %c0 = arith.constant 0 : index
    %c0_0 = arith.constant 0 : index
    %c0_1 = arith.constant 0 : index
    %0 = vector.load %arg2[%c0, %c0_0, %c0_1] : memref<1x8x342xf32, #tpu.memory_space<vmem>>, vector<1x8x288xf32>
    %1 = vector.shape_cast %0 : vector<1x8x288xf32> to vector<8x288xf32>
    %c0_2 = arith.constant 0 : index
    %c0_3 = arith.constant 0 : index
    %c1 = arith.constant 1 : index
    %2 = vector.load %arg2[%c0_2, %c0_3, %c1] : memref<1x8x342xf32, #tpu.memory_space<vmem>>, vector<1x8x288xf32>
    %3 = vector.shape_cast %2 : vector<1x8x288xf32> to vector<8x288xf32>
    %c0_4 = arith.constant 0 : index
    %c0_5 = arith.constant 0 : index
    %c2 = arith.constant 2 : index
    %4 = vector.load %arg2[%c0_4, %c0_5, %c2] : memref<1x8x342xf32, #tpu.memory_space<vmem>>, vector<1x8x288xf32>
    %5 = vector.shape_cast %4 : vector<1x8x288xf32> to vector<8x288xf32>
    %c0_6 = arith.constant 0 : index
    %c0_7 = arith.constant 0 : index
    %c18 = arith.constant 18 : index
    %6 = vector.load %arg2[%c0_6, %c0_7, %c18] : memref<1x8x342xf32, #tpu.memory_space<vmem>>, vector<1x8x288xf32>
    %7 = vector.shape_cast %6 : vector<1x8x288xf32> to vector<8x288xf32>
    %c0_8 = arith.constant 0 : index
    %c0_9 = arith.constant 0 : index
    %c19 = arith.constant 19 : index
    %8 = vector.load %arg2[%c0_8, %c0_9, %c19] : memref<1x8x342xf32, #tpu.memory_space<vmem>>, vector<1x8x288xf32>
    %9 = vector.shape_cast %8 : vector<1x8x288xf32> to vector<8x288xf32>
    %c0_10 = arith.constant 0 : index
    %c0_11 = arith.constant 0 : index
    %c20 = arith.constant 20 : index
    %10 = vector.load %arg2[%c0_10, %c0_11, %c20] : memref<1x8x342xf32, #tpu.memory_space<vmem>>, vector<1x8x288xf32>
    %11 = vector.shape_cast %10 : vector<1x8x288xf32> to vector<8x288xf32>
    %c0_12 = arith.constant 0 : index
    %c0_13 = arith.constant 0 : index
    %c36 = arith.constant 36 : index
    %12 = vector.load %arg2[%c0_12, %c0_13, %c36] : memref<1x8x342xf32, #tpu.memory_space<vmem>>, vector<1x8x288xf32>
    %13 = vector.shape_cast %12 : vector<1x8x288xf32> to vector<8x288xf32>
    %c0_14 = arith.constant 0 : index
    %c0_15 = arith.constant 0 : index
    %c37 = arith.constant 37 : index
    %14 = vector.load %arg2[%c0_14, %c0_15, %c37] : memref<1x8x342xf32, #tpu.memory_space<vmem>>, vector<1x8x288xf32>
    %15 = vector.shape_cast %14 : vector<1x8x288xf32> to vector<8x288xf32>
    %c0_16 = arith.constant 0 : index
    %c0_17 = arith.constant 0 : index
    %c38 = arith.constant 38 : index
    %16 = vector.load %arg2[%c0_16, %c0_17, %c38] : memref<1x8x342xf32, #tpu.memory_space<vmem>>, vector<1x8x288xf32>
    %17 = vector.shape_cast %16 : vector<1x8x288xf32> to vector<8x288xf32>
    %18 = tpu.concatenate %1, %3, %5, %7, %9, %11, %13, %15, %17 in 0 : vector<8x288xf32>, vector<8x288xf32>, vector<8x288xf32>, vector<8x288xf32>, vector<8x288xf32>, vector<8x288xf32>, vector<8x288xf32>, vector<8x288xf32>, vector<8x288xf32> -> vector<72x288xf32>
    %c0_18 = arith.constant 0 : index
    %c0_19 = arith.constant 0 : index
    %19 = vector.load %arg3[%c0_18, %c0_19] : memref<8x72xf32, #tpu.memory_space<vmem>>, vector<8x72xf32>
    %cst = arith.constant dense<0.000000e+00> : vector<8x288xf32>
    %20 = tpu.matmul %19, %18, %cst {dimension_numbers = #tpu.dot_dimension_numbers<[1], [0], [0], [1], [0, 0, 1, 1], [], []>} : vector<8x72xf32>, vector<72x288xf32>, vector<8x288xf32> -> vector<8x288xf32>
    %c0_20 = arith.constant 0 : index
    %c0_21 = arith.constant 0 : index
    %c0_22 = arith.constant 0 : index
    %21 = vector.load %arg5[%c0_20, %c0_21, %c0_22] : memref<1x8x288xf32, #tpu.memory_space<vmem>>, vector<1x8x288xf32>
    %22 = vector.shape_cast %21 : vector<1x8x288xf32> to vector<8x288xf32>
    %23 = vector.shape_cast %20 : vector<8x288xf32> to vector<1x8x288xf32>
    tpu.vector_store %arg5[%c0_20, %c0_21, %c0_22], %23 {strides = array<i32>} : memref<1x8x288xf32, #tpu.memory_space<vmem>>, vector<1x8x288xf32>,
    %c0_23 = arith.constant 0 : index
    %c0_24 = arith.constant 0 : index
    %24 = vector.load %arg4[%c0_23, %c0_24] : memref<1x288xf32, #tpu.memory_space<vmem>>, vector<1x288xf32>
    %25 = vector.broadcast %24 : vector<1x288xf32> to vector<8x288xf32>
    %26 = arith.mulf %20, %25 : vector<8x288xf32>
    %cst_25 = arith.constant dense<0.000000e+00> : vector<8xf32>
    %27 = vector.multi_reduction <add>, %26, %cst_25 [1] : vector<8x288xf32> to vector<8xf32>
    %28 = vector.shape_cast %27 : vector<8xf32> to vector<8x1xf32>
    %29 = arith.mulf %20, %26 : vector<8x288xf32>
    %cst_26 = arith.constant dense<0.000000e+00> : vector<8xf32>
    %30 = vector.multi_reduction <add>, %29, %cst_26 [1] : vector<8x288xf32> to vector<8xf32>
    %31 = vector.shape_cast %30 : vector<8xf32> to vector<8x1xf32>
    %c0_i32 = arith.constant 0 : i32
    %32 = arith.cmpi eq, %arg1, %c0_i32 : i32
    %33 = arith.extui %32 : i1 to i32
    %c0_i32_27 = arith.constant 0 : i32
    %34 = arith.cmpi ne, %33, %c0_i32_27 : i32
    scf.if %34 {
      %cst_36 = arith.constant 0.000000e+00 : f32
      %41 = vector.broadcast %cst_36 : f32 to vector<8x1xf32>
      %c0_37 = arith.constant 0 : index
      %c0_38 = arith.constant 0 : index
      %42 = vector.load %arg6[%c0_37, %c0_38] : memref<8x1xf32, #tpu.memory_space<vmem>>, vector<8x1xf32>
      tpu.vector_store %arg6[%c0_37, %c0_38], %41 {strides = array<i32>} : memref<8x1xf32, #tpu.memory_space<vmem>>, vector<8x1xf32>,
      %cst_39 = arith.constant 0.000000e+00 : f32
      %43 = vector.broadcast %cst_39 : f32 to vector<8x1xf32>
      %c0_40 = arith.constant 0 : index
      %c0_41 = arith.constant 0 : index
      %44 = vector.load %arg7[%c0_40, %c0_41] : memref<8x1xf32, #tpu.memory_space<vmem>>, vector<8x1xf32>
      tpu.vector_store %arg7[%c0_40, %c0_41], %43 {strides = array<i32>} : memref<8x1xf32, #tpu.memory_space<vmem>>, vector<8x1xf32>,
    } else {
    }
    %c0_28 = arith.constant 0 : index
    %c0_29 = arith.constant 0 : index
    %35 = vector.load %arg6[%c0_28, %c0_29] : memref<8x1xf32, #tpu.memory_space<vmem>>, vector<8x1xf32>
    %36 = arith.addf %35, %28 : vector<8x1xf32>
    %c0_30 = arith.constant 0 : index
    %c0_31 = arith.constant 0 : index
    %37 = vector.load %arg6[%c0_30, %c0_31] : memref<8x1xf32, #tpu.memory_space<vmem>>, vector<8x1xf32>
    tpu.vector_store %arg6[%c0_30, %c0_31], %36 {strides = array<i32>} : memref<8x1xf32, #tpu.memory_space<vmem>>, vector<8x1xf32>,
    %c0_32 = arith.constant 0 : index
    %c0_33 = arith.constant 0 : index
    %38 = vector.load %arg7[%c0_32, %c0_33] : memref<8x1xf32, #tpu.memory_space<vmem>>, vector<8x1xf32>
    %39 = arith.addf %38, %31 : vector<8x1xf32>
    %c0_34 = arith.constant 0 : index
    %c0_35 = arith.constant 0 : index
    %40 = vector.load %arg7[%c0_34, %c0_35] : memref<8x1xf32, #tpu.memory_space<vmem>>, vector<8x1xf32>
    tpu.vector_store %arg7[%c0_34, %c0_35], %39 {strides = array<i32>} : memref<8x1xf32, #tpu.memory_space<vmem>>, vector<8x1xf32>,
    return
  }
  func.func @transform_0(%arg0: i32, %arg1: i32) -> (i32, i32, i32) {
    %c0_i32 = arith.constant 0 : i32
    %c0_i32_0 = arith.constant 0 : i32
    %c0_i32_1 = arith.constant 0 : i32
    return %arg1, %c0_i32, %c0_i32_0 : i32, i32, i32
  }
  func.func @transform_1(%arg0: i32, %arg1: i32) -> (i32, i32) {
    %c0_i32 = arith.constant 0 : i32
    %c0_i32_0 = arith.constant 0 : i32
    return %arg0, %c0_i32 : i32, i32
  }
  func.func @transform_2(%arg0: i32, %arg1: i32) -> (i32, i32) {
    %c0_i32 = arith.constant 0 : i32
    %c0_i32_0 = arith.constant 0 : i32
    %c0_i32_1 = arith.constant 0 : i32
    return %c0_i32, %c0_i32_0 : i32, i32
  }
  func.func @transform_3(%arg0: i32, %arg1: i32) -> (i32, i32, i32) {
    %c0_i32 = arith.constant 0 : i32
    %c0_i32_0 = arith.constant 0 : i32
    return %arg1, %arg0, %c0_i32 : i32, i32, i32
  }
  func.func @transform_4(%arg0: i32, %arg1: i32) -> (i32, i32) {
    %c0_i32 = arith.constant 0 : i32
    %c0_i32_0 = arith.constant 0 : i32
    return %arg0, %c0_i32 : i32, i32
  }
  func.func @transform_5(%arg0: i32, %arg1: i32) -> (i32, i32) {
    %c0_i32 = arith.constant 0 : i32
    %c0_i32_0 = arith.constant 0 : i32
    return %arg0, %c0_i32 : i32, i32
  }
}

</mosaic_0001>

<bundles_post_ra>
// kernel: tpu_custom_call.1
= control target key start
LH: loop header
LB: loop body
LE: loop exit
PB: predicated region body
PF: predicated region fallthrough
CT: control target
= control target key end

     0   :  { %s1413_s0 = inlined_call_operand.hbm [shape: f32[2,8,342], index: 0, kind: input, shape index: {}]   ;;  %s1414_s1 = inlined_call_operand.hbm [shape: f32[8,72], index: 1, kind: input, shape index: {}]   ;;  %s1415_s2 = inlined_call_operand.vmem [shape: f32[1,288], index: 2, kind: input, shape index: {}]   ;;  %s1416_s3 = inlined_call_operand.hbm [shape: f32[2,8,288], index: 3, kind: output, shape index: {0}]   ;;  %s1417_s4 = inlined_call_operand.vmem [shape: f32[8,1], index: 4, kind: output, shape index: {1}]   ;;  %s1418_s5 = inlined_call_operand.vmem [shape: f32[8,1], index: 5, kind: output, shape index: {2}]  }
   0x1   :  { %1423 = sst [smem:[#allocation11_spill]] %s1414_s1 }
   0x2   :  { %11 = vsyncpa [#allocation3], 0 }
   0x3   :  { %13 = vsyncpa [#allocation3 + $0x1], 0 }
   0x4   :  { %14 = vsyncpa [#allocation6], 0 }
   0x5   :  { %15 = vsyncpa [#allocation4], 0 }
   0x6   :  { %17 = vsyncpa [#allocation4 + $0x1], 0  ;;  %s1151_s18 = smov 0   ;;  %s1153_s19 = smov 0  }
   0x7   :  { %s1155_s20 = smov 0   ;;  %s1157_s21 = smov 0  }
   0x8   :  { %s1159_s22 = smov 0   ;;  %s1161_s23 = smov 0  }
   0x9 LB: > { %s761_s24 = sadd.s32 4294967295, %s1104_s23   ;;  %s762_s25 = sadd.s32 4294967294, %s1104_s23   ;;  %s1104_s23 = sphi %s1161_s23, %s23_s23   ;;  %s1100_s22 = sphi %s1159_s22, %s1445_s22   ;;  %s1096_s21 = sphi %s1157_s21, %s1444_s21   ;;  %s1092_s20 = sphi %s1155_s20, %s1443_s20   ;;  %s1088_s19 = sphi %s1153_s19, %s1442_s19   ;;  %s1084_s18 = sphi %s1151_s18, %s1441_s18  }
   0xa   : > { %p55_p0 = scmp.ne.s32.totalorder %s1088_s19, %s1084_s18  ;;  %p1185_p1 = scmp.eq.s32.totalorder %s761_s24, 0 }
   0xb   : > { %p1189_p2 = scmp.eq.s32.totalorder %s761_s24, 1  ;;  %p134_p3 = scmp.eq.s32.totalorder %s762_s25, 1 }
   0xc   : > { %s1424_s26 = scalar_select %p1185_p1, 1, 0 }
   0xd   : > { %s1425_s27 = scalar_select %p1189_p2, 1, 0 }
   0xe   : > { %p1195_p4 = por %p1185_p1, %p55_p0  ;;  %p763_p5 = scmp.ge.s32.totalorder %s1104_s23, 1 }
   0xf   : > { %p1200_p6 = por %p134_p3, %p55_p0  ;;  %p193_p7 = scmp.lt.s32.totalorder %s1104_s23, 3 }
  0x10   : > { %s1426_s28 = scalar_select %p1195_p4, 1, 0 }
  0x11   : > { %s1427_s29 = scalar_select %p1200_p6, 1, 0 }
  0x12   : > { %p1205_p8 = pnand %p763_p5, %p193_p7  ;;  %s1106_s6 = smov [#allocation5]  }
  0x13   : > { %s208_s7 = sshll.u32 %s1106_s6, 4  ;;  %s32_s9 = sadd.s32 1, %s1100_s22  ;;  %s209_s7 = int_to_ptr.vmem [resolvable:$true] %s208_s7 }
  0x14   : > { %s1428_s30 = scalar_select %p1205_p8, 1, 0 }
  0x15   : > { %p848_p10 = pneg %p1205_p8  ;;  %s42_s10 = sadd.s32 1, %s1092_s20 }
  0x16   : > { %p1220_p12 = scmp.ge.s32.totalorder %s32_s9, 2  ;;  %s1431_s1 = sld [smem:[#allocation11_spill]] }
  0x17   : > { %p1214_p11 = pnand %p848_p10, %p1185_p1 }
  0x18   : > { %s1430_s11 = scalar_select %p1220_p12, 1, 0 }
  0x19   : > { %p962_p0 = pneg %p1214_p11 }
  0x1c   : > { %s960_s14 = scalar_lea.hbm %s1431_s1, 128 }
  0x1d   : > { %p961_p13 = scmp.ne.s32.totalorder %s1431_s1, %s960_s14  ;;  %p967_p7 = scmp.lt.u32.totalorder %s960_s14, %s1431_s1 }
  0x1f   : > { %p963_p3 = pnand %p962_p0, %p961_p13 }
  0x21   : > { %p964_p5 = pneg %p963_p3 }
  0x23   : > { %p969_p10 = pnand %p967_p7, %p964_p5 }
  0x25   : > { %972 = shalt.err (!%p969_p10)
}
  0x26   : > { %s973_s25 = scalar_lea.vmem %s209_s7, 128  ;;  %p981_p4 = scmp.lt.s32.totalorder %s209_s7, %s209_s7 }
  0x27   : > { %p974_p9 = scmp.ne.s32.totalorder %s209_s7, %s973_s25  ;;  %p982_p8 = scmp.lt.s32.totalorder %s973_s25, %s973_s25 }
  0x29   : > { %p976_p6 = pnand %p974_p9, %p962_p0  ;;  %p983_p2 = por %p982_p8, %p981_p4 }
  0x2b   : > { %p977_p1 = pneg %p976_p6 }
  0x2d   : > { %p984_p12 = pnand %p983_p2, %p977_p1 }
  0x2f   : > { %987 = shalt.err (!%p984_p12)
}
  0x30   : > { %851 = dma.hbm_to_vmem [thread:$0]  (!%p1214_p11), %s1431_s1, 128, %s209_s7, [#allocation6]  }
  0x31   : > { %p1432_p4 = scmp.ne.s32.totalorder %s1430_s11, 0  ;;  %p49_p1 = scmp.ne.s32.totalorder %s1092_s20, %s1088_s19 }
  0x32   : > { %p50_p2 = scmp.eq.s32.totalorder %s1104_s23, 0  ;;  %p861_p6 = scmp.lt.s32.totalorder %s1104_s23, 2 }
  0x33   : > { %s1447_s9 = smov (%p1432_p4, %s32_s9), 0  ;;  %p1433_p12 = scmp.ne.s32.totalorder %s1425_s27, 0 }
  0x34   : > { %s39_s8 = ssub.s32 %s1100_s22, %s1447_s9  ;;  %p51_p9 = por %p50_p2, %p49_p1 }
  0x35   : > { %p40_p8 = scmp.eq.s32.totalorder %s39_s8, 0  ;;  %p1252_p13 = por %p1433_p12, %p49_p1 }
  0x36   : > { %s222_s14 = sand.u32 1, %s1092_s20   ;;  %s837_s11 = smul.u32 384, %s1100_s22 }
  0x37   : > { %s1260_s15 = scalar_select %p40_p8, %s1092_s20, %s42_s10  }
  0x38   : > { %s836_s7 = smul.u32 24, %s222_s14  ;;  %p1263_p11 = pnand %p861_p6, %p51_p9 }
  0x39   : > { %s1270_s27 = scalar_lea.hbm %s1413_s0, %s837_s11  ;;  %s223_s6 = scalar_lea.sflag [#allocation3], %s222_s14 }
  0x3a   : > { %s226_s25 = scalar_lea.vmem [#allocation2], %s836_s7  ;;  %s988_s12 = scalar_lea.hbm %s1270_s27, 384 }
  0x3b   : > { %s234_s10 = sshll.u32 %s226_s25, 4  ;;  %p989_p0 = scmp.ne.s32.totalorder %s1270_s27, %s988_s12  ;;  %s1272_s10 = int_to_ptr.vmem [resolvable:$true] %s234_s10 }
  0x3c   : > { %p990_p3 = pneg %p1263_p11  ;;  %s993_s17 = scalar_lea.hbm %s1413_s0, 768 }
  0x3d   : > { %p994_p10 = scmp.lt.u32.totalorder %s1270_s27, %s1413_s0  ;;  %p995_p4 = scmp.lt.u32.totalorder %s993_s17, %s988_s12 }
  0x3e   : > { %p991_p5 = pnand %p990_p3, %p989_p0  ;;  %p997_p2 = scmp.lt.u32.totalorder %s988_s12, %s1270_s27 }
  0x3f   : > { %p996_p1 = por %p995_p4, %p994_p10 }
  0x40   : > { %p992_p7 = pneg %p991_p5 }
  0x41   : > { %p998_p6 = por %p997_p2, %p996_p1 }
  0x43   : > { %p999_p8 = pnand %p998_p6, %p992_p7 }
  0x45   : > { %1002 = shalt.err (!%p999_p8)
}
  0x46   : > { %s1003_s14 = scalar_lea.vmem %s1272_s10, 384  ;;  %s1107_s7 = smov [#allocation2]  }
  0x47   : > { %p1004_p9 = scmp.ne.s32.totalorder %s1272_s10, %s1003_s14  ;;  %s1008_s25 = sshll.u32 %s1107_s7, 4  ;;  %s1009_s25 = int_to_ptr.vmem [resolvable:$false] %s1008_s25 }
  0x48   : > { %s1010_s1 = scalar_lea.vmem %s1009_s25, 768  ;;  %p1011_p5 = scmp.lt.s32.totalorder %s1272_s10, %s1009_s25 }
  0x49   : > { %p1006_p12 = pnand %p1004_p9, %p990_p3  ;;  %p1012_p10 = scmp.lt.s32.totalorder %s1010_s1, %s1003_s14 }
  0x4b   : > { %p1007_p0 = pneg %p1006_p12  ;;  %p1013_p4 = por %p1012_p10, %p1011_p5 }
  0x4d   : > { %p1014_p1 = pnand %p1013_p4, %p1007_p0 }
  0x4f   : > { %1017 = shalt.err (!%p1014_p1)
}
  0x50   : > { %855 = dma.hbm_to_vmem [thread:$0]  (!%p1263_p11), %s1270_s27, 384, %s1272_s10, %s223_s6  }
  0x51   : > { %p1436_p7 = scmp.ne.s32.totalorder %s1428_s30, 0 }
  0x52   : > { %s1302_s12 = sand.u32 (!%p1436_p7), 1, %s1088_s19   ;;  %p1437_p3 = scmp.ne.s32.totalorder (!%p1436_p7), %s1426_s28, 0 }
  0x53   : > { %243 = sbr.rel (%p1436_p7) target bundleno = 634 (0x27a), region = 32  ;;  %s246_s11 = scalar_lea.sflag (!%p1436_p7), [#allocation3], %s1302_s12 }
  0x54   : > { %s838_s8 = smul.u32 (!%p1436_p7), 24, %s1302_s12 }
  0x56   : > { %s249_s17 = scalar_lea.vmem (!%p1436_p7), [#allocation2], %s838_s8 }
  0x5a   : > { %1071 = dma.done.wait (%p1437_p3), %s246_s11, 384  }
  0x5b   : > { %1073 = vsyncadd (%p1437_p3), %s246_s11, 4294966912  ;;  %p1438_p11 = scmp.ne.s32.totalorder %s1424_s26, 0 }
  0x5d   : > { %1075 = dma.done.wait (%p1438_p11), [#allocation6], 128  }
  0x5e   : > { %1077 = vsyncadd (%p1438_p11), [#allocation6], 4294967168  ;;  %v1108_v0 = vmov 0.0|0.0   ;;  %v297_v1 = vld [vmem:[%s249_s17 + $0x8] sm:$0xff]  ;;  %v298_v2 = vld [vmem:[%s249_s17 + $0x10] sm:$0xff]  ;;  %s1109_s30 = smov 126  }
  0x5f   : > { %824 = vmatprep.subr.bf16.mxu1 %v1108_v0  ;;  %v930_v3 = vpack.i.bf16 %v298_v2, %v297_v1  ;;  %s1110_s16 = smov 127   ;;  %v296_v4 = vld [vmem:[%s249_s17] sm:$0xff]  ;;  %s1111_s27 = smov 110   ;;  %v1114_v5 = vmov 0.0   ;;  %vm1117_vm0 = vmmov 0   ;;  %vm308_vm1 = vcmask 1039360  }
  0x60   : > { %s1112_s28 = smov 108   ;;  %s1113_s26 = smov 109   ;;  %467 = vmatprep.mubr.f32.mxu0 %v1114_v5  ;;  %805 = vmatprep.mubr.msk.f32.mxu1 %vm1117_vm0, %v1114_v5  ;;  %vm332_vm2 = vcmask 900096   ;;  %vm320_vm3 = vcmask 1031168   ;;  %vm356_vm4 = vcmask 883712   ;;  %vm344_vm5 = vcmask 891904  }
  0x61   : > { %931 = vrot.lane.b32.xlu1 %v930_v3, %s1109_s30  ;;  %926 = vrot.lane.b32.xlu0 %v930_v3, %s1110_s16  ;;  %s1115_s10 = smov 91   ;;  %s1116_s6 = smov 92   ;;  %vm380_vm6 = vcmask 744448   ;;  %vm368_vm7 = vcmask 752640   ;;  %vm392_vm8 = vcmask 736256   ;;  %v398_v60 = vld [vmem:[#allocation5] sm:$0xff] }
  0x62   : > { %s1118_s24 = smov 90   ;;  %vm399_vm9 = vcmask 588800   ;;  %vm546_vm10 = vcmask 261120   ;;  %s1332_s25 = scalar_lea.vmem [#allocation7], %s838_s8 }
  0x63   : > { %p771_p2 = scmp.ne.s32.totalorder %s1096_s21, 0 }
  0x64   : > { %vm585_vm11 = vcmask (!%p771_p2), 7168  }
  0x65   : > { %936 = vrot.lane.b32.xlu1 %v930_v3, %s1111_s27  ;;  %302 = vrot.lane.b32.xlu0 %v296_v4, %s1110_s16 }
  0x69   : > { %326 = vrot.lane.b32.xlu1 %v296_v4, %s1111_s27  ;;  %314 = vrot.lane.b32.xlu0 %v296_v4, %s1109_s30 }
  0x6d   : > { %946 = vrot.lane.b32.xlu1 %v930_v3, %s1112_s28  ;;  %941 = vrot.lane.b32.xlu0 %v930_v3, %s1113_s26 }
  0x71   : > { %350 = vrot.lane.b32.xlu1 %v296_v4, %s1112_s28  ;;  %338 = vrot.lane.b32.xlu0 %v296_v4, %s1113_s26 }
  0x75   : > { %956 = vrot.lane.b32.xlu1 %v930_v3, %s1115_s10  ;;  %951 = vrot.lane.b32.xlu0 %v930_v3, %s1116_s6 }
  0x79   : > { %374 = vrot.lane.b32.xlu1 %v296_v4, %s1115_s10  ;;  %362 = vrot.lane.b32.xlu0 %v296_v4, %s1116_s6 }
  0x7d   : > { %390 = vrot.lane.b32.xlu1 %v298_v2, %s1118_s24  ;;  %388 = vrot.lane.b32.xlu0 %v297_v1, %s1118_s24 }
  0x81   : > { %386 = vrot.lane.b32.xlu0 %v296_v4, %s1118_s24 }
  0xd3   : > { %v932_v6 = vpop.permute.xlu1 %931  ;;  %v927_v7 = vpop.permute.xlu0 %926 }
  0xd4   : > { %v929_v8 = vunpack.i.h.bf16 %v927_v7  ;;  %v928_v9 = vunpack.i.l.bf16 %v927_v7  ;;  %v934_v10 = vunpack.i.h.bf16 %v932_v6  ;;  %v933_v11 = vunpack.i.l.bf16 %v932_v6 }
  0xd6   : > { %v825_v12 = vpack.c.bf16 %v929_v8, %v298_v2  ;;  %v310_v13 = vsel %vm308_vm1, %v928_v9, %v929_v8  ;;  %v322_v22 = vsel %vm320_vm3, %v933_v11, %v934_v10  ;;  %v550_v2 = vlaneseq }
  0xd7   : > { %v937_v14 = vpop.permute.xlu1 %936  ;;  %v303_v15 = vpop.permute.xlu0 %302  ;;  %v808_v16 = vpack.c.bf16 %v310_v13, %v297_v1 }
  0xd8   : > { %v939_v17 = vunpack.i.h.bf16 %v937_v14  ;;  %v938_v18 = vunpack.i.l.bf16 %v937_v14  ;;  %v309_v19 = vsel %vm308_vm1, %v303_v15, %v928_v9  ;;  %826 = vmatpush3.bf16.msra.mxu1 %v825_v12  ;;  %v551_v3 = vshrl.u32 %v550_v2, 7 }
  0xd9   : > { %809 = vmatprep.subr.bf16.mxu0 %v808_v16  ;;  %827 = vmatprep.subr.bf16.mxu1 %v1108_v0  ;;  %v810_v20 = vpack.c.bf16 %v309_v19, %v296_v4 }
  0xda   : > { %v828_v21 = vpack.c.bf16 %v939_v17, %v934_v10  ;;  %v334_v23 = vsel %vm332_vm2, %v938_v18, %v939_v17  ;;  %v560_v4 = vsub.s32 2, %v551_v3  ;;  %v552_v6 = vsub.s32 0, %v551_v3 }
  0xdb   : > { %v327_v24 = vpop.permute.xlu1 %326  ;;  %811 = vmatpush1.bf16.msra.mxu0 %v810_v20  ;;  %v315_v25 = vpop.permute.xlu0 %314  ;;  %v812_v26 = vpack.c.bf16 %v334_v23, %v322_v22  ;;  %v556_v7 = vsub.s32 1, %v551_v3 }
  0xdc   : > { %v333_v27 = vsel %vm332_vm2, %v327_v24, %v938_v18  ;;  %v321_v28 = vsel %vm320_vm3, %v315_v25, %v933_v11  ;;  %829 = vmatpush3.bf16.msra.mxu1 %v828_v21 }
  0xdd   : > { %v814_v29 = vpack.c.bf16 %v333_v27, %v321_v28  ;;  %813 = vmatprep.subr.bf16.mxu0 %v812_v26  ;;  %830 = vmatprep.subr.bf16.mxu1 %v1108_v0 }
  0xdf   : > { %v947_v30 = vpop.permute.xlu1 %946  ;;  %815 = vmatpush1.bf16.msra.mxu0 %v814_v29  ;;  %v942_v31 = vpop.permute.xlu0 %941  ;;  %v1119_v29 = vmov (!%p771_p2), 0.0  }
  0xe0   : > { %v949_v32 = vunpack.i.h.bf16 %v947_v30  ;;  %v948_v33 = vunpack.i.l.bf16 %v947_v30  ;;  %v944_v34 = vunpack.i.h.bf16 %v942_v31  ;;  %v943_v35 = vunpack.i.l.bf16 %v942_v31  ;;  %586 = vst.msk [vmem:[%s1417_s4] sm:$0xff] (!%p771_p2), %vm585_vm11, %v1119_v29  ;;  %587 = vst.msk [vmem:[%s1418_s5] sm:$0xff] (!%p771_p2), %vm585_vm11, %v1119_v29 }
  0xe2   : > { %v831_v36 = vpack.c.bf16 %v949_v32, %v944_v34  ;;  %v346_v37 = vsel %vm344_vm5, %v943_v35, %v944_v34  ;;  %v358_v38 = vsel %vm356_vm4, %v948_v33, %v949_v32 }
  0xe3   : > { %v351_v39 = vpop.permute.xlu1 %350  ;;  %v339_v40 = vpop.permute.xlu0 %338  ;;  %v816_v41 = vpack.c.bf16 %v358_v38, %v346_v37 }
  0xe4   : > { %v357_v42 = vsel %vm356_vm4, %v351_v39, %v948_v33  ;;  %v345_v43 = vsel %vm344_vm5, %v339_v40, %v943_v35  ;;  %832 = vmatpush3.bf16.msra.mxu1 %v831_v36 }
  0xe5   : > { %v818_v44 = vpack.c.bf16 %v357_v42, %v345_v43  ;;  %817 = vmatprep.subr.bf16.mxu0 %v816_v41  ;;  %833 = vmatprep.subr.bf16.mxu1 %v1108_v0 }
  0xe7   : > { %v957_v45 = vpop.permute.xlu1 %956  ;;  %v952_v46 = vpop.permute.xlu0 %951  ;;  %819 = vmatpush1.bf16.msra.mxu0 %v818_v44 }
  0xe8   : > { %v959_v47 = vunpack.i.h.bf16 %v957_v45  ;;  %v958_v48 = vunpack.i.l.bf16 %v957_v45  ;;  %v954_v49 = vunpack.i.h.bf16 %v952_v46  ;;  %v953_v50 = vunpack.i.l.bf16 %v952_v46 }
  0xea   : > { %v834_v51 = vpack.c.bf16 %v959_v47, %v954_v49  ;;  %v370_v52 = vsel %vm368_vm7, %v953_v50, %v954_v49  ;;  %v382_v53 = vsel %vm380_vm6, %v958_v48, %v959_v47 }
  0xeb   : > { %v375_v54 = vpop.permute.xlu1 %374  ;;  %v363_v55 = vpop.permute.xlu0 %362  ;;  %v820_v56 = vpack.c.bf16 %v382_v53, %v370_v52 }
  0xec   : > { %v381_v57 = vsel %vm380_vm6, %v375_v54, %v958_v48  ;;  %v369_v58 = vsel %vm368_vm7, %v363_v55, %v953_v50  ;;  %835 = vmatpush3.bf16.msra.mxu1 %v834_v51 }
  0xed   : > { %v822_v59 = vpack.c.bf16 %v381_v57, %v369_v58  ;;  %821 = vmatprep.subr.bf16.mxu0 %v820_v56  ;;  %803 = vmatprep.subr.mxu1 %v1114_v5  ;;  %v548_v5 = vld [vmem:[%s1415_s2] sm:$0x7] }
  0xee   : > { %v561_v9 = vrot.slane %v548_v5, %v560_v4  ;;  %v553_v11 = vrot.slane %v548_v5, %v552_v6  ;;  %v557_v12 = vrot.slane %v548_v5, %v556_v7 }
  0xef   : > { %v391_v61 = vpop.permute.xlu1 %390  ;;  %v389_v62 = vpop.permute.xlu0 %388  ;;  %823 = vmatpush1.bf16.msra.mxu0 %v822_v59 }
  0xf0   : > { %v394_v63 = vsel %vm392_vm8, %v389_v62, %v391_v61  ;;  %804 = vmatpush3.msra.mxu1 %v391_v61 }
  0xf1   : > { %419 = vmatprep.subr.mxu0 %v394_v63  ;;  %806 = vmatmul.mubr.msk.f32.vlgmr.msra.gmra.mrb[0].mxu1 %vm399_vm9, %v398_v60 }
  0xf3   : > { %v387_v0 = vpop.permute.xlu0 %386 }
  0xf4   : > { %v393_v1 = vsel %vm392_vm8, %v387_v0, %v389_v62 }
  0xf5   : > { %420 = vmatpush1.msra.mxu0 %v393_v1 }
  0xf6   : > { %769 = vmatmul.mubr.msk.f32.vlgmr.msra.gmra.mrb[0].mxu0 %vm399_vm9, %v398_v60 }
 0x1c4   : > { %v540_v8 = vpop.f32.mrb[0].mxu1 }
 0x1c5   : > { %547 = vst.msk [vmem:[%s1332_s25 + $0x10] sm:$0xff] %vm546_vm10, %v540_v8  ;;  %v807_v10 = vpop.f32.mrb[1].mxu1  ;;  %v567_v13 = vmul.f32 %v561_v9, %v540_v8 }
 0x1c7   : > { %v575_v19 = vmul.f32 %v567_v13, %v540_v8  ;;  %v569_v20 = vsel %vm546_vm10, %v567_v13, 0.0 }
 0x1c9   : > { %v469_v14 = vpop.f32.mrb[0].mxu0  ;;  %v577_v25 = vsel %vm546_vm10, %v575_v19, 0.0 }
 0x1ca   : > { %544 = vst [vmem:[%s1332_s25] sm:$0xff] %v469_v14  ;;  %v565_v15 = vmul.f32 %v553_v11, %v469_v14  ;;  %v471_v16 = vpop.f32.mrb[1].mxu0 }
 0x1cb   : > { %545 = vst [vmem:[%s1332_s25 + $0x8] sm:$0xff] %v471_v16  ;;  %v566_v17 = vmul.f32 %v557_v12, %v471_v16 }
 0x1cc   : > { %v573_v18 = vmul.f32 %v565_v15, %v469_v14 }
 0x1cd   : > { %v574_v21 = vmul.f32 %v566_v17, %v471_v16  ;;  %v568_v22 = vadd.f32 %v566_v17, %v565_v15 }
 0x1cf   : > { %v570_v23 = vadd.f32 %v569_v20, %v568_v22  ;;  %v576_v24 = vadd.f32 %v574_v21, %v573_v18 }
 0x1d1   : > { %571 = vadd.xlane.f32.xlu1 %v570_v23  ;;  %v578_v26 = vadd.f32 %v577_v25, %v576_v24 }
 0x1d3   : > { %579 = vadd.xlane.f32.xlu0 %v578_v26 }
 0x25a   : > { %584 = sbr.rel (%p771_p2) target bundleno = 609 (0x261), region = 44 }
 0x25e   : > { %v572_v27 = vpop.xlane.xlu1 %571 }
 0x260   : > { %v580_v28 = vpop.xlane.xlu0 %579 }
 0x261 PF: > { %v588_v30 = vld [vmem:[%s1417_s4] sm:$0xff]  ;;  %vm590_vm12 = vcmask 7168   ;;  %s839_s26 = smul.u32 384, %s1096_s21  ;;  %s620_s10 = sshll.u32 %s1332_s25, 4  ;;  %s1360_s10 = int_to_ptr.vmem [resolvable:$true] %s620_s10 }
 0x262   : > { %v592_v31 = vld [vmem:[%s1418_s5] sm:$0xff]  ;;  %v589_v32 = vadd.f32 %v588_v30, %v572_v27  ;;  %s596_s21 = scalar_lea.sflag [#allocation4], %s1302_s12  ;;  %s1018_s25 = scalar_lea.vmem %s1360_s10, 384 }
 0x263   : > { %v593_v33 = vadd.f32 %v592_v31, %v580_v28  ;;  %s1358_s14 = scalar_lea.hbm %s1416_s3, %s839_s26  ;;  %p1019_p6 = scmp.ne.s32.totalorder %s1360_s10, %s1018_s25 }
 0x264   : > { %591 = vst.msk [vmem:[%s1417_s4] sm:$0xff] %vm590_vm12, %v589_v32  ;;  %s1120_s17 = smov [#allocation7]  }
 0x265   : > { %594 = vst.msk [vmem:[%s1418_s5] sm:$0xff] %vm590_vm12, %v593_v33  ;;  %p1020_p8 = pnand %p1019_p6, %p1252_p13  ;;  %s1022_s30 = sshll.u32 %s1120_s17, 4  ;;  %s1023_s30 = int_to_ptr.vmem [resolvable:$false] %s1022_s30 }
 0x266   : > { %s1024_s16 = scalar_lea.vmem %s1023_s30, 768  ;;  %p1025_p12 = scmp.lt.s32.totalorder %s1360_s10, %s1023_s30 }
 0x267   : > { %p1021_p9 = pneg %p1020_p8  ;;  %p1026_p0 = scmp.lt.s32.totalorder %s1024_s16, %s1018_s25 }
 0x269   : > { %p1027_p5 = por %p1026_p0, %p1025_p12 }
 0x26b   : > { %p1028_p10 = pnand %p1027_p5, %p1021_p9 }
 0x26d   : > { %1031 = shalt.err (!%p1028_p10)
}
 0x26e   : > { %s1032_s12 = scalar_lea.hbm %s1358_s14, 384  ;;  %s1036_s26 = scalar_lea.hbm %s1416_s3, 768 }
 0x26f   : > { %p1033_p4 = scmp.ne.s32.totalorder %s1358_s14, %s1032_s12  ;;  %p1037_p3 = scmp.lt.u32.totalorder %s1358_s14, %s1416_s3 }
 0x270   : > { %p1038_p11 = scmp.lt.u32.totalorder %s1036_s26, %s1032_s12  ;;  %p1040_p6 = scmp.lt.u32.totalorder %s1032_s12, %s1358_s14 }
 0x271   : > { %p1034_p1 = pnand %p1033_p4, %p1252_p13 }
 0x272   : > { %p1039_p2 = por %p1038_p11, %p1037_p3 }
 0x273   : > { %p1035_p7 = pneg %p1034_p1 }
 0x274   : > { %p1041_p8 = por %p1040_p6, %p1039_p2 }
 0x276   : > { %p1042_p9 = pnand %p1041_p8, %p1035_p7 }
 0x278   : > { %1045 = shalt.err (!%p1042_p9)
}
 0x279   : > { %846 = dma.vmem_to_hbm [thread:$0]  (%p1252_p13), %s1360_s10, 384, %s1358_s14, %s596_s21  }
 0x27a PF: > { %s652_s7 = sand.u32 1, %s1084_s18   ;;  %p1439_p12 = scmp.ne.s32.totalorder %s1427_s29, 0 }
 0x27b   : > { %p1440_p0 = scmp.ge.s32.totalorder %s1104_s23, 2  ;;  %s653_s1 = scalar_lea.sflag [#allocation4], %s652_s7 }
 0x27d   : > { %p857_p5 = pnand %p1440_p0, %p1439_p12 }
 0x27f   : > { %1079 = dma.done.wait (!%p857_p5), %s653_s1, 384  }
 0x280   : > { %1081 = vsyncadd (!%p857_p5), %s653_s1, 4294966912  ;;  %s23_s23 = sadd.s32 1, %s1104_s23   ;;  %s1441_s18 = smov %s1088_s19 }
 0x281   : > { %p20_p10 = scmp.ge.s32.totalorder %s23_s23, 4   ;;  %s1442_s19 = smov %s1092_s20 }
 0x282   : > { %s1443_s20 = smov %s1260_s15  ;;  %s1444_s21 = smov %s1100_s22 }
 0x283   : > { %s1445_s22 = smov %s1447_s9  ;;  %22 = sbr.rel (!%p20_p10) target bundleno = 9 (0x9), region = 110 }
 0x28a   :  { %658 = vsyncpa [#allocation3], 1 }
 0x28b   :  { %660 = vsyncpa [#allocation3 + $0x1], 1 }
 0x28c   :  { %661 = vsyncpa [#allocation6], 1 }
 0x28d   :  { %662 = vsyncpa [#allocation4], 1 }
 0x28e   :  { %664 = vsyncpa [#allocation4 + $0x1], 1 }

</bundles_post_ra>
